<compile_context>
chip_gen: v6e
topology: v6e:2x2x1
jax: 0.10.0
libtpu: 0.0.40
codegen_flags: <defaults>
</compile_context>

<pallas_src>
import jax
import jax.numpy as jnp
from jax.experimental import pallas as pl
from jax.experimental.pallas import tpu as pltpu


def _round_up(x, m):
    return ((x + m - 1) // m) * m


def _vmem_budget_bytes():
    """Generation-aware VMEM budget (v7x: 64 MiB physical, v5e/v6e: 128 MiB)."""
    cap = 128 * 1024 * 1024
    try:
        info = pltpu.get_tpu_info()
        cap = int(getattr(info, "vmem_capacity_bytes", cap))
    except Exception:
        pass
    # 25% headroom for compiler-internal scratch, never ask for more than 64 MiB.
    return min(64 * 1024 * 1024, (cap * 3) // 4)


# --------------------------------------------------------------------------
# Kernels
# --------------------------------------------------------------------------
def _mlp_kernel_resident(x_ref, w1_ref, b1_ref, w2_ref, b2_ref, o_ref):
    # Grid: (i over batch tiles,).  All weights VMEM-resident (constant index_map).
    # x_ref: (tm, K)  w1_ref: (K, H)  b1_ref: (1, H) f32
    # w2_ref: (H, n_pad)  b2_ref: (1, n_pad) f32  o_ref: (tm, n_pad) f32
    h = jnp.dot(x_ref[...], w1_ref[...], preferred_element_type=jnp.float32)
    h = jnp.maximum(h + b1_ref[...], 0.0)                      # bias + ReLU (f32)
    out = jnp.dot(h.astype(w2_ref.dtype), w2_ref[...],
                  preferred_element_type=jnp.float32)
    o_ref[...] = (out + b2_ref[...]).astype(o_ref.dtype)


def _mlp_kernel_streamed(x_ref, w1_ref, b1_ref, w2_ref, b2_ref, o_ref, acc_ref):
    # Grid: (i over batch tiles, k over K tiles).  Fallback for huge input_size.
    k = pl.program_id(1)

    @pl.when(k == 0)
    def _():
        acc_ref[...] = jnp.zeros_like(acc_ref)

    acc_ref[...] += jnp.dot(x_ref[...], w1_ref[...],
                            preferred_element_type=jnp.float32)

    @pl.when(k == pl.num_programs(1) - 1)
    def _():
        h = jnp.maximum(acc_ref[...] + b1_ref[...], 0.0).astype(w2_ref.dtype)
        out = jnp.dot(h, w2_ref[...], preferred_element_type=jnp.float32)
        o_ref[...] = (out + b2_ref[...]).astype(o_ref.dtype)


# --------------------------------------------------------------------------
# One-time parameter preparation (padding / casting hoisted out of forward)
# --------------------------------------------------------------------------
def prepare_params(w1, b1, w2, b2, *, compute_dtype=jnp.bfloat16,
                   max_resident_bytes=None):
    """w1: (input_size, hidden), b1: (1, hidden), w2: (hidden, num_nodes),
    b2: (1, num_nodes).  Returns a dict consumed by mlp_forecast()."""
    input_size, hidden = w1.shape
    num_nodes = w2.shape[1]
    n_pad = _round_up(num_nodes, 128)                # lane-dense output columns

    budget = _vmem_budget_bytes()
    if max_resident_bytes is None:
        max_resident_bytes = int(0.6 * budget)

    itemsize = jnp.dtype(compute_dtype).itemsize
    # Worst case the pipeline double-buffers the (constant) W1 block.
    resident = 2 * input_size * hidden * itemsize <= max_resident_bytes

    w1c = w1.astype(compute_dtype)
    b1c = b1.astype(jnp.float32).reshape(1, hidden)
    w2p = jnp.zeros((hidden, n_pad), compute_dtype).at[:, :num_nodes].set(
        w2.astype(compute_dtype))
    b2p = jnp.zeros((1, n_pad), jnp.float32).at[:, :num_nodes].set(
        b2.astype(jnp.float32))

    tk = None
    if not resident:                                  # pre-pad K for streaming
        tk = min(2048, _round_up(input_size, 128))
        k_pad = _round_up(input_size, tk)
        w1c = jnp.pad(w1c, ((0, k_pad - input_size), (0, 0)))

    return dict(w1=w1c, b1=b1c, w2=w2p, b2=b2p,
                input_size=input_size, hidden=hidden,
                num_nodes=num_nodes, n_pad=n_pad,
                resident=resident, tk=tk,
                compute_dtype=compute_dtype, vmem_budget=budget)


# --------------------------------------------------------------------------
# Forward
# --------------------------------------------------------------------------
def mlp_forecast(x, params):
    """x: (B, input_len, num_nodes) -> (B, num_nodes) float32."""
    batch = x.shape[0]
    input_size = params["input_size"]
    hidden = params["hidden"]
    num_nodes = params["num_nodes"]
    n_pad = params["n_pad"]
    cdt = params["compute_dtype"]
    budget = params["vmem_budget"]
    w1, b1, w2, b2 = params["w1"], params["b1"], params["w2"], params["b2"]
    isz = jnp.dtype(cdt).itemsize

    x_flat = x.reshape(batch, -1).astype(cdt)         # == torch .view + cast
    assert x_flat.shape[1] == input_size

    # Generation-aware M tile cap (v7x budget 48 MiB -> 256, v5e/v6e -> 512).
    tm_cap = 512 if budget >= 64 * 1024 * 1024 else 256
    if batch <= tm_cap:
        tm, b_pad = batch, batch                      # full-dim block, no padding
    else:
        tm = tm_cap                                   # multiple of 16 (bf16 pack)
        b_pad = _round_up(batch, tm)

    if params["resident"]:
        if b_pad != batch:
            x_flat = jnp.pad(x_flat, ((0, b_pad - batch), (0, 0)))
        grid = (b_pad // tm,)
        flops = 2 * b_pad * (input_size * hidden + hidden * n_pad)
        bytes_accessed = (x_flat.size * isz + w1.size * isz + w2.size * isz
                          + b1.size * 4 + b2.size * 4 + b_pad * n_pad * 4)

        out_p = pl.pallas_call(
            _mlp_kernel_resident,
            out_shape=jax.ShapeDtypeStruct((b_pad, n_pad), jnp.float32),
            grid_spec=pltpu.PrefetchScalarGridSpec(
                num_scalar_prefetch=0,
                grid=grid,
                in_specs=[
                    pl.BlockSpec((tm, input_size), lambda i: (i, 0)),   # x tile
                    pl.BlockSpec((input_size, hidden), lambda i: (0, 0)),  # W1 resident
                    pl.BlockSpec((1, hidden), lambda i: (0, 0)),        # b1 resident
                    pl.BlockSpec((hidden, n_pad), lambda i: (0, 0)),    # W2 resident
                    pl.BlockSpec((1, n_pad), lambda i: (0, 0)),         # b2 resident
                ],
                out_specs=pl.BlockSpec((tm, n_pad), lambda i: (i, 0)),
            ),
            compiler_params=pltpu.CompilerParams(
                dimension_semantics=("parallel",),
                vmem_limit_bytes=budget,
            ),
            cost_estimate=pl.CostEstimate(
                flops=flops, transcendentals=0, bytes_accessed=bytes_accessed),
        )(x_flat, w1, b1, w2, b2)
    else:
        # K-streamed fallback for very large input_len*num_nodes.
        tk = params["tk"]
        k_pad = w1.shape[0]
        pad_b, pad_k = b_pad - batch, k_pad - input_size
        if pad_b or pad_k:
            x_flat = jnp.pad(x_flat, ((0, pad_b), (0, pad_k)))
        grid = (b_pad // tm, k_pad // tk)
        m_tiles = grid[0]
        flops = 2 * b_pad * (k_pad * hidden + hidden * n_pad)
        bytes_accessed = (x_flat.size * isz
                          + m_tiles * w1.size * isz      # W1 re-streamed per M tile
                          + w2.size * isz + b1.size * 4 + b2.size * 4
                          + b_pad * n_pad * 4)

        out_p = pl.pallas_call(
            _mlp_kernel_streamed,
            out_shape=jax.ShapeDtypeStruct((b_pad, n_pad), jnp.float32),
            grid_spec=pltpu.PrefetchScalarGridSpec(
                num_scalar_prefetch=0,
                grid=grid,
                in_specs=[
                    pl.BlockSpec((tm, tk), lambda i, k: (i, k)),        # x slab
                    pl.BlockSpec((tk, hidden), lambda i, k: (k, 0)),    # W1 K-slab
                    pl.BlockSpec((1, hidden), lambda i, k: (0, 0)),     # b1 resident
                    pl.BlockSpec((hidden, n_pad), lambda i, k: (0, 0)), # W2 resident
                    pl.BlockSpec((1, n_pad), lambda i, k: (0, 0)),      # b2 resident
                ],
                out_specs=pl.BlockSpec((tm, n_pad), lambda i, k: (i, 0)),
                scratch_shapes=[pltpu.VMEM((tm, hidden), jnp.float32)],
            ),
            compiler_params=pltpu.CompilerParams(
                dimension_semantics=("parallel", "arbitrary"),
                vmem_limit_bytes=budget,
            ),
            cost_estimate=pl.CostEstimate(
                flops=flops, transcendentals=0, bytes_accessed=bytes_accessed),
        )(x_flat, w1, b1, w2, b2)

    return out_p[:batch, :num_nodes]


# --------------------------------------------------------------------------
# Params / reference
# --------------------------------------------------------------------------
def init_params(key, input_len, num_nodes, hidden_dim):
    """nn.Linear-shaped params; weights stored as (in_features, out_features)."""
    input_size = input_len * num_nodes
    k1, k2, k3, k4 = jax.random.split(key, 4)
    lim1 = 1.0 / jnp.sqrt(jnp.float32(input_size))
    lim2 = 1.0 / jnp.sqrt(jnp.float32(hidden_dim))
    w1 = jax.random.uniform(k1, (input_size, hidden_dim), jnp.float32, -lim1, lim1)
    b1 = jax.random.uniform(k2, (1, hidden_dim), jnp.float32, -lim1, lim1)
    w2 = jax.random.uniform(k3, (hidden_dim, num_nodes), jnp.float32, -lim2, lim2)
    b2 = jax.random.uniform(k4, (1, num_nodes), jnp.float32, -lim2, lim2)
    return w1, b1, w2, b2


def _reference(x, w1, b1, w2, b2):
    x_flat = x.reshape(x.shape[0], -1)
    return jnp.maximum(x_flat @ w1 + b1, 0.0) @ w2 + b2


if __name__ == "__main__":
    key = jax.random.PRNGKey(0)

    # ---- small shapes, f32 compute path (tight check) ----
    batch, input_len, num_nodes, hidden_dim = 2, 8, 16, 32
    kx, kp, key = jax.random.split(key, 3)
    x = jax.random.normal(kx, (batch, input_len, num_nodes), jnp.float32)
    w1, b1, w2, b2 = init_params(kp, input_len, num_nodes, hidden_dim)
    params_f32 = prepare_params(w1, b1, w2, b2, compute_dtype=jnp.float32)
    out = jax.block_until_ready(mlp_forecast(x, params_f32))
    ref = _reference(x, w1, b1, w2, b2)
    assert out.shape == (batch, num_nodes)
    assert jnp.allclose(out, ref, atol=1e-4, rtol=1e-4)

    # ---- module-default shapes, bf16 compute, resident-W1 fast path ----
    batch, input_len, num_nodes, hidden_dim = 64, 12, 325, 512
    kx, kp = jax.random.split(key)
    x = jax.random.normal(kx, (batch, input_len, num_nodes), jnp.float32)
    w1, b1, w2, b2 = init_params(kp, input_len, num_nodes, hidden_dim)
    params_bf16 = prepare_params(w1, b1, w2, b2, compute_dtype=jnp.bfloat16)
    out_res = jax.block_until_ready(mlp_forecast(x, params_bf16))
    ref = _reference(x, w1, b1, w2, b2)
    assert out_res.shape == (batch, num_nodes)
    # bf16 inputs / f32 accumulation: loose tolerance vs the f32 reference.
    assert jnp.allclose(out_res, ref, atol=5e-2, rtol=5e-2)

    # ---- same shapes, force the K-streamed fallback path ----
    params_stream = prepare_params(w1, b1, w2, b2, compute_dtype=jnp.bfloat16,
                                   max_resident_bytes=0)
    assert not params_stream["resident"]
    out_str = jax.block_until_ready(mlp_forecast(x, params_stream))
    assert jnp.allclose(out_str, ref, atol=5e-2, rtol=5e-2)
    assert jnp.allclose(out_str, out_res, atol=2e-3, rtol=2e-3)

    print("KERNEL_OK")
</pallas_src>

<mosaic_0001>
module attributes {stable_mosaic.version = 11 : i64} {
  func.func @_mlp_kernel_resident(%arg0: i32, %arg1: memref<2x128xf32, #tpu.memory_space<vmem>>, %arg2: memref<128x32xf32, #tpu.memory_space<vmem>>, %arg3: memref<1x32xf32, #tpu.memory_space<vmem>>, %arg4: memref<32x128xf32, #tpu.memory_space<vmem>>, %arg5: memref<1x128xf32, #tpu.memory_space<vmem>>, %arg6: memref<2x128xf32, #tpu.memory_space<vmem>>) attributes {dimension_semantics = [#tpu.dimension_semantics<parallel>], iteration_bounds = array<i64: 1>, scalar_prefetch = 0 : i64, scratch_operands = 0 : i64, tpu.core_type = #tpu.core_type<tc>, window_params = [{transform_indices = @transform_0, window_bounds = array<i64: 2, 128>}, {pipeline_mode = #tpu.pipeline_mode<synchronous>, transform_indices = @transform_1, window_bounds = array<i64: 128, 32>}, {pipeline_mode = #tpu.pipeline_mode<synchronous>, transform_indices = @transform_2, window_bounds = array<i64: 1, 32>}, {pipeline_mode = #tpu.pipeline_mode<synchronous>, transform_indices = @transform_3, window_bounds = array<i64: 32, 128>}, {pipeline_mode = #tpu.pipeline_mode<synchronous>, transform_indices = @transform_4, window_bounds = array<i64: 1, 128>}, {transform_indices = @transform_5, window_bounds = array<i64: 2, 128>}]} {
    %c0 = arith.constant 0 : index
    %c0_0 = arith.constant 0 : index
    %0 = vector.load %arg1[%c0, %c0_0] : memref<2x128xf32, #tpu.memory_space<vmem>>, vector<2x128xf32>
    %c0_1 = arith.constant 0 : index
    %c0_2 = arith.constant 0 : index
    %1 = vector.load %arg2[%c0_1, %c0_2] : memref<128x32xf32, #tpu.memory_space<vmem>>, vector<128x32xf32>
    %cst = arith.constant dense<0.000000e+00> : vector<2x32xf32>
    %2 = tpu.matmul %0, %1, %cst {dimension_numbers = #tpu.dot_dimension_numbers<[1], [0], [0], [1], [0, 0, 1, 1], [], []>} : vector<2x128xf32>, vector<128x32xf32>, vector<2x32xf32> -> vector<2x32xf32>
    %c0_3 = arith.constant 0 : index
    %c0_4 = arith.constant 0 : index
    %3 = vector.load %arg3[%c0_3, %c0_4] : memref<1x32xf32, #tpu.memory_space<vmem>>, vector<1x32xf32>
    %4 = vector.broadcast %3 : vector<1x32xf32> to vector<2x32xf32>
    %5 = arith.addf %2, %4 : vector<2x32xf32>
    %cst_5 = arith.constant 0.000000e+00 : f32
    %6 = vector.broadcast %cst_5 : f32 to vector<2x32xf32>
    %7 = arith.maximumf %5, %6 : vector<2x32xf32>
    %c0_6 = arith.constant 0 : index
    %c0_7 = arith.constant 0 : index
    %8 = vector.load %arg4[%c0_6, %c0_7] : memref<32x128xf32, #tpu.memory_space<vmem>>, vector<32x128xf32>
    %cst_8 = arith.constant dense<0.000000e+00> : vector<2x128xf32>
    %9 = tpu.matmul %7, %8, %cst_8 {dimension_numbers = #tpu.dot_dimension_numbers<[1], [0], [0], [1], [0, 0, 1, 1], [], []>} : vector<2x32xf32>, vector<32x128xf32>, vector<2x128xf32> -> vector<2x128xf32>
    %c0_9 = arith.constant 0 : index
    %c0_10 = arith.constant 0 : index
    %10 = vector.load %arg5[%c0_9, %c0_10] : memref<1x128xf32, #tpu.memory_space<vmem>>, vector<1x128xf32>
    %11 = vector.broadcast %10 : vector<1x128xf32> to vector<2x128xf32>
    %12 = arith.addf %9, %11 : vector<2x128xf32>
    %c0_11 = arith.constant 0 : index
    %c0_12 = arith.constant 0 : index
    %13 = vector.load %arg6[%c0_11, %c0_12] : memref<2x128xf32, #tpu.memory_space<vmem>>, vector<2x128xf32>
    tpu.vector_store %arg6[%c0_11, %c0_12], %12 {strides = array<i32>} : memref<2x128xf32, #tpu.memory_space<vmem>>, vector<2x128xf32>,
    return
  }
  func.func @transform_0(%arg0: i32) -> (i32, i32) {
    %c0_i32 = arith.constant 0 : i32
    %c0_i32_0 = arith.constant 0 : i32
    return %arg0, %c0_i32 : i32, i32
  }
  func.func @transform_1(%arg0: i32) -> (i32, i32) {
    %c0_i32 = arith.constant 0 : i32
    %c0_i32_0 = arith.constant 0 : i32
    %c0_i32_1 = arith.constant 0 : i32
    return %c0_i32, %c0_i32_0 : i32, i32
  }
  func.func @transform_2(%arg0: i32) -> (i32, i32) {
    %c0_i32 = arith.constant 0 : i32
    %c0_i32_0 = arith.constant 0 : i32
    %c0_i32_1 = arith.constant 0 : i32
    return %c0_i32, %c0_i32_0 : i32, i32
  }
  func.func @transform_3(%arg0: i32) -> (i32, i32) {
    %c0_i32 = arith.constant 0 : i32
    %c0_i32_0 = arith.constant 0 : i32
    %c0_i32_1 = arith.constant 0 : i32
    return %c0_i32, %c0_i32_0 : i32, i32
  }
  func.func @transform_4(%arg0: i32) -> (i32, i32) {
    %c0_i32 = arith.constant 0 : i32
    %c0_i32_0 = arith.constant 0 : i32
    %c0_i32_1 = arith.constant 0 : i32
    return %c0_i32, %c0_i32_0 : i32, i32
  }
  func.func @transform_5(%arg0: i32) -> (i32, i32) {
    %c0_i32 = arith.constant 0 : i32
    %c0_i32_0 = arith.constant 0 : i32
    return %arg0, %c0_i32 : i32, i32
  }
}

</mosaic_0001>

<bundles_post_ra>
// kernel: tpu_custom_call.1
= control target key start
LH: loop header
LB: loop body
LE: loop exit
PB: predicated region body
PF: predicated region fallthrough
CT: control target
= control target key end

     0   :  { %v312_v1 = vmov 0.0   ;;  %vm313_vm0 = vmmov 0   ;;  %s417_s0 = inlined_call_operand.vmem [shape: f32[2,128], index: 0, kind: input, shape index: {}]   ;;  %s418_s1 = inlined_call_operand.vmem [shape: f32[128,32], index: 1, kind: input, shape index: {}]   ;;  %s419_s2 = inlined_call_operand.vmem [shape: f32[1,32], index: 2, kind: input, shape index: {}]   ;;  %s420_s3 = inlined_call_operand.vmem [shape: f32[32,128], index: 3, kind: input, shape index: {}]   ;;  %s421_s4 = inlined_call_operand.vmem [shape: f32[1,128], index: 4, kind: input, shape index: {}]   ;;  %s422_s5 = inlined_call_operand.hbm [shape: f32[2,128], index: 5, kind: output, shape index: {}]  }
   0x1   :  { %v37_v0 = vld [vmem:[%s418_s1 + $0x78] sm:$0xff]  ;;  %241 = vmatprep.subr.mxu0 %v312_v1  ;;  %v36_v2 = vld [vmem:[%s418_s1 + $0x70] sm:$0xff]  ;;  %273 = vmatprep.mubr.msk.f32.mxu0 %vm313_vm0, %v312_v1  ;;  %v35_v3 = vld [vmem:[%s418_s1 + $0x68] sm:$0xff] }
   0x2   :  { %242 = vmatpush3.msra.mxu0 %v37_v0  ;;  %276 = vmatprep.subr.mxu1 %v312_v1  ;;  %v34_v4 = vld [vmem:[%s418_s1 + $0x60] sm:$0xff]  ;;  %v119_v5 = vld [vmem:[%s420_s3 + $0x18] sm:$0xff] }
   0x3   :  { %243 = vmatprep.subr.mxu0 %v312_v1  ;;  %284 = vmatprep.mubr.msk.f32.mxu1 %vm313_vm0, %v312_v1 }
   0x4   :  { %244 = vmatpush3.msra.mxu0 %v36_v2  ;;  %277 = vmatpush3.msra.mxu1 %v119_v5 }
   0x5   :  { %245 = vmatprep.subr.mxu0 %v312_v1 }
   0x6   :  { %246 = vmatpush3.msra.mxu0 %v35_v3 }
   0x7   :  { %10 = vsyncpa [#allocation3], 0  ;;  %247 = vmatprep.subr.mxu0 %v312_v1  ;;  %v33_v6 = vld [vmem:[%s418_s1 + $0x58] sm:$0xff]  ;;  %278 = vmatprep.subr.mxu1 %v312_v1  ;;  %v32_v7 = vld [vmem:[%s418_s1 + $0x50] sm:$0xff]  ;;  %vm127_vm1 = vcmask 261120   ;;  %s314_s12 = smov [#allocation2]  }
   0x8   :  { %248 = vmatpush3.msra.mxu0 %v34_v4  ;;  %v31_v8 = vld [vmem:[%s418_s1 + $0x48] sm:$0xff]  ;;  %v30_v9 = vld [vmem:[%s418_s1 + $0x40] sm:$0xff]  ;;  %v29_v10 = vld [vmem:[%s418_s1 + $0x38] sm:$0xff]  ;;  %s208_s13 = sshll.u32 %s314_s12, 4  ;;  %s209_s13 = int_to_ptr.vmem [resolvable:$true] %s208_s13 }
   0x9   :  { %249 = vmatprep.subr.mxu0 %v312_v1  ;;  %v28_v11 = vld [vmem:[%s418_s1 + $0x30] sm:$0xff]  ;;  %v27_v12 = vld [vmem:[%s418_s1 + $0x28] sm:$0xff]  ;;  %v26_v13 = vld [vmem:[%s418_s1 + $0x20] sm:$0xff]  ;;  %p295_p1 = scmp.lt.s32.totalorder %s209_s13, %s209_s13 }
   0xa   :  { %250 = vmatpush3.msra.mxu0 %v33_v6  ;;  %v25_v14 = vld [vmem:[%s418_s1 + $0x18] sm:$0xff]  ;;  %v24_v15 = vld [vmem:[%s418_s1 + $0x10] sm:$0xff]  ;;  %v23_v16 = vld [vmem:[%s418_s1 + $0x8] sm:$0xff] }
   0xb   :  { %251 = vmatprep.subr.mxu0 %v312_v1  ;;  %v22_v17 = vld [vmem:[%s418_s1] sm:$0xff]  ;;  %v118_v19 = vld [vmem:[%s420_s3 + $0x10] sm:$0xff]  ;;  %v117_v20 = vld [vmem:[%s420_s3 + $0x8] sm:$0xff] }
   0xc   :  { %252 = vmatpush3.msra.mxu0 %v32_v7  ;;  %v21_v18 = vld [vmem:[%s417_s0] sm:$0x3]  ;;  %279 = vmatpush3.msra.mxu1 %v118_v19 }
   0xd   :  { %253 = vmatprep.subr.mxu0 %v312_v1  ;;  %280 = vmatprep.subr.mxu1 %v312_v1  ;;  %v116_v21 = vld [vmem:[%s420_s3] sm:$0xff]  ;;  %s290_s3 = scalar_lea.vmem %s209_s13, 32 }
   0xe   :  { %254 = vmatpush3.msra.mxu0 %v31_v8  ;;  %281 = vmatpush3.msra.mxu1 %v117_v20  ;;  %v216_v22 = vld [vmem:[%s419_s2] ss:$0 sm:$0xff]  ;;  %p291_p0 = scmp.ne.s32.totalorder %s209_s13, %s290_s3  ;;  %p296_p2 = scmp.lt.s32.totalorder %s290_s3, %s290_s3 }
   0xf   :  { %255 = vmatprep.subr.mxu0 %v312_v1  ;;  %282 = vmatprep.subr.mxu1 %v312_v1  ;;  %v217_v27 = vld [vmem:[%s421_s4] ss:$0 sm:$0xff] }
  0x10   :  { %256 = vmatpush3.msra.mxu0 %v30_v9  ;;  %283 = vmatpush3.msra.mxu1 %v116_v21  ;;  %p297_p3 = por %p296_p2, %p295_p1 }
  0x11   :  { %257 = vmatprep.subr.mxu0 %v312_v1 }
  0x12   :  { %258 = vmatpush3.msra.mxu0 %v29_v10  ;;  %p298_p4 = pnand %p297_p3, %p291_p0 }
  0x13   :  { %259 = vmatprep.subr.mxu0 %v312_v1 }
  0x14   :  { %260 = vmatpush3.msra.mxu0 %v28_v11 }
  0x15   :  { %261 = vmatprep.subr.mxu0 %v312_v1 }
  0x16   :  { %262 = vmatpush3.msra.mxu0 %v27_v12 }
  0x17   :  { %263 = vmatprep.subr.mxu0 %v312_v1 }
  0x18   :  { %264 = vmatpush3.msra.mxu0 %v26_v13 }
  0x19   :  { %265 = vmatprep.subr.mxu0 %v312_v1 }
  0x1a   :  { %266 = vmatpush3.msra.mxu0 %v25_v14 }
  0x1b   :  { %267 = vmatprep.subr.mxu0 %v312_v1 }
  0x1c   :  { %268 = vmatpush3.msra.mxu0 %v24_v15 }
  0x1d   :  { %269 = vmatprep.subr.mxu0 %v312_v1 }
  0x1e   :  { %270 = vmatpush3.msra.mxu0 %v23_v16 }
  0x1f   :  { %271 = vmatprep.subr.mxu0 %v312_v1 }
  0x20   :  { %272 = vmatpush3.msra.mxu0 %v22_v17 }
  0x21   :  { %274 = vmatmul.mubr.f32.vlgmr.msra.gmra.mxu0 %v21_v18 }
  0xe1   :  { %v111_v23 = vpop.f32.mrf.mxu0 }
  0xe2   :  { %v112_v24 = vadd.f32 %v216_v22, %v111_v23 }
  0xe3   :  { %v275_v25 = vpop.f32.mrf.mxu0 }
  0xe4   :  { %v115_v26 = vmax.f32 %v112_v24, 0.0 }
  0xe6   :  { %285 = vmatmul.mubr.msk.f32.vlgmr.msra.gmra.mxu1 %vm127_vm1, %v115_v26 }
 0x1a6   :  { %v197_v28 = vpop.f32.mrf.mxu1 }
 0x1a7   :  { %v198_v29 = vadd.f32 %v217_v27, %v197_v28 }
 0x1a8   :  { %v286_v30 = vpop.f32.mrf.mxu1 }
 0x1a9   :  { %201 = vst [vmem:[#allocation2] sm:$0x3] %v198_v29 }
 0x1aa   :  { %301 = shalt.err (!%p298_p4)
}
 0x1ab   :  { %211 = dma.vmem_to_hbm [thread:$0]  %s209_s13, 32, %s422_s5, [#allocation3]  }
 0x1ac   :  { %310 = dma.done.wait [#allocation3], 32  }
 0x1ad   :  { %311 = vsyncadd [#allocation3], 4294967264 }
 0x1ae   :  { %215 = vsyncpa [#allocation3], 1 }

</bundles_post_ra>
